<compile_context>
chip_gen: v6e
topology: v6e:2x2x1
jax: 0.10.0
libtpu: 0.0.40
codegen_flags: <defaults>
</compile_context>

<pallas_src>
import functools

import jax
import jax.numpy as jnp
from jax.experimental import pallas as pl
from jax.experimental.pallas import tpu as pltpu


def _device_vmem_bytes():
    """VMEM capacity of the current TPU, conservative fallback if unknown."""
    try:
        return int(pltpu.get_tpu_info().vmem_capacity_bytes)
    except Exception:
        return 64 * 2**20          # v7x-sized conservative default


def _tv_partial_kernel(*refs, l, w, shift_v, shift_h, tp, p,
                       need_plane_mask, inline_mx):
    # refs = (x_ref, [mx_ref,] y_out_ref, x_out_ref)
    #   x_ref:  (TP, L) block of flattened planes (L = H*W), native dtype.
    #   mx_ref: (1, L) f32 horizontal-neighbour mask (only when W is not a
    #           power of two; otherwise generated in-kernel).
    #   y_out_ref / x_out_ref: (1, 8, 128) per-block partial sums.
    if inline_mx:
        x_ref, y_out_ref, x_out_ref = refs
        mx_ref = None
    else:
        x_ref, mx_ref, y_out_ref, x_out_ref = refs

    x = x_ref[...]
    if x.dtype != jnp.float32:
        x = x.astype(jnp.float32)                     # (TP, L) f32

    # Lane masks: one (1, L) iota + compare, broadcast along sublanes at the
    # multiply (no DMA'd mask arrays, no per-element compare+select).
    idx = jax.lax.broadcasted_iota(jnp.int32, (1, l), 1)
    my = (idx < (l - w)).astype(jnp.float32)          # vertical neighbour exists
    if inline_mx:
        mx = (jnp.bitwise_and(idx, w - 1) != (w - 1)).astype(jnp.float32)
    else:
        mx = mx_ref[...]                              # (1, L) f32

    if need_plane_mask:
        # Partial last block: rows past the real plane count hold stale VMEM
        # (possibly NaN/Inf), so keep a select here (NaN * 0.0 would leak).
        row = jax.lax.broadcasted_iota(jnp.int32, x.shape, 0)
        ok = (pl.program_id(0) * tp + row) < p        # (TP, L) bool

    # Neighbour at flat offset +W (vertical) / +1 (horizontal) via XLU rolls:
    # roll(x, L-k)[i] == x[(i + k) % L]; wrapped positions are the masked ones.
    # Reduce the vertical diffs before materializing the horizontal ones to
    # keep only ~3 f32 block-sized intermediates live at a time.
    dy = jnp.abs(x - pltpu.roll(x, shift=shift_v, axis=1)) * my
    if need_plane_mask:
        dy = jnp.where(ok, dy, 0.0)
    y_part = jnp.sum(dy)

    dx = jnp.abs(x - pltpu.roll(x, shift=shift_h, axis=1)) * mx
    if need_plane_mask:
        dx = jnp.where(ok, dx, 0.0)
    x_part = jnp.sum(dx)

    y_out_ref[...] = jnp.broadcast_to(y_part, y_out_ref.shape)
    x_out_ref[...] = jnp.broadcast_to(x_part, x_out_ref.shape)


def _tv_sums(pred_nchw, target_block_bytes=8 * 1024 * 1024):
    """Returns (sum |vertical diffs|, sum |horizontal diffs|) as f32 scalars."""
    n, c, h, w = pred_nchw.shape
    p = n * c
    l = h * w
    x2 = pred_nchw.reshape(p, l)                      # free row-major reshape

    itemsize = x2.dtype.itemsize
    # Packed sublane tile for the input dtype: 8 (f32), 16 (bf16), 32 (int8).
    row_tile = 8 * max(1, 4 // itemsize)
    lanes_padded = max(128, -(-l // 128) * 128)
    row_in_bytes = lanes_padded * itemsize
    row_f32_bytes = lanes_padded * 4

    # Block rows: as many as fit the f32 target AND the device VMEM budget
    # (double-buffered input block + ~4 live f32 block intermediates).
    vmem_cap = _device_vmem_bytes()
    usable = int(0.75 * vmem_cap)
    per_row_cost = 2 * row_in_bytes + 4 * row_f32_bytes
    rows_budget = max(1, min((usable - (2 << 20)) // per_row_cost,
                             target_block_bytes // row_f32_bytes))

    if p <= row_tile:
        tp = p                                        # single (whole-array) block
    else:
        # Cap at round_up(ceil(P/2), tile) so the grid has >= 2 blocks and
        # both v7x TensorCores get work under dimension_semantics="parallel".
        half = -(-p // 2)
        half_up = -(-half // row_tile) * row_tile
        budget_dn = max(row_tile, (rows_budget // row_tile) * row_tile)
        tp = min(budget_dn, half_up)
    g = -(-p // tp)                                   # cdiv
    need_plane_mask = (p % tp) != 0

    inline_mx = (w & (w - 1)) == 0                    # power-of-two W: iota+AND mask

    blk_in_bytes = tp * row_in_bytes
    blk_f32_bytes = tp * row_f32_bytes
    vmem_need = 2 * blk_in_bytes + 4 * blk_f32_bytes + (2 << 20)
    if not inline_mx:
        vmem_need += 2 * row_f32_bytes                # double-buffered mask row
    vmem_limit = int(min(usable, max(32 * 2**20, vmem_need)))

    kernel = functools.partial(
        _tv_partial_kernel,
        l=l, w=w,
        shift_v=(l - w) % max(l, 1),
        shift_h=(l - 1) % max(l, 1),
        tp=tp, p=p,
        need_plane_mask=need_plane_mask,
        inline_mx=inline_mx)

    in_specs = [pl.BlockSpec((tp, l), lambda b: (b, 0))]
    args = [x2]
    mask_bytes = 0
    if not inline_mx:
        # General-W fallback: one tiny (1, L) f32 horizontal mask, built once
        # in plain JAX (hoisted out of the per-step kernel body).
        idx = jnp.arange(l, dtype=jnp.int32)
        mask_x = ((idx % w) != (w - 1)).astype(jnp.float32).reshape(1, l)
        in_specs.append(pl.BlockSpec((1, l), lambda b: (0, 0)))
        args.append(mask_x)
        mask_bytes = l * 4

    out_block = pl.BlockSpec((1, 8, 128), lambda b: (b, 0, 0))
    part_y, part_x = pl.pallas_call(
        kernel,
        out_shape=(jax.ShapeDtypeStruct((g, 8, 128), jnp.float32),
                   jax.ShapeDtypeStruct((g, 8, 128), jnp.float32)),
        grid=(g,),
        in_specs=in_specs,
        out_specs=(out_block, out_block),
        compiler_params=pltpu.CompilerParams(
            dimension_semantics=("parallel",),
            vmem_limit_bytes=vmem_limit),
        cost_estimate=pl.CostEstimate(
            flops=6 * p * l,
            transcendentals=0,
            bytes_accessed=p * l * itemsize + mask_bytes + 2 * g * 8 * 128 * 4),
    )(*args)

    y_sum = jnp.sum(part_y[:, 0, 0])
    x_sum = jnp.sum(part_x[:, 0, 0])
    return y_sum, x_sum


def weighted_tv_loss(pred, loss_weight=1.0, reduction="mean"):
    """Equivalent of WeightedTVLoss(loss_weight, reduction)(pred, weight=None)."""
    if reduction not in ("mean", "sum"):
        raise ValueError(f"Unsupported reduction mode: {reduction}. Supported ones are: mean | sum")
    n, c, h, w = pred.shape
    y_sum, x_sum = _tv_sums(pred)
    if reduction == "mean":
        # NOTE: h == 1 (or w == 1) gives a zero-element diff tensor; like
        # torch's l1_loss(mean) on an empty tensor this yields NaN.
        y_red = y_sum / jnp.float32(n * c * (h - 1) * w)
        x_red = x_sum / jnp.float32(n * c * h * (w - 1))
    else:
        y_red = y_sum
        x_red = x_sum
    # L1Loss.forward multiplies each term by loss_weight before the final add.
    return jnp.float32(loss_weight) * x_red + jnp.float32(loss_weight) * y_red


def _reference(pred, loss_weight=1.0, reduction="mean"):
    p = pred.astype(jnp.float32)
    y = jnp.abs(p[:, :, :-1, :] - p[:, :, 1:, :])
    x = jnp.abs(p[:, :, :, :-1] - p[:, :, :, 1:])
    if reduction == "mean":
        y_red, x_red = jnp.mean(y), jnp.mean(x)
    else:
        y_red, x_red = jnp.sum(y), jnp.sum(x)
    return loss_weight * x_red + loss_weight * y_red


if __name__ == "__main__":
    key = jax.random.PRNGKey(0)
    pred = jax.random.normal(key, (2, 4, 16, 16), dtype=jnp.float32)

    out = jax.block_until_ready(weighted_tv_loss(pred, loss_weight=1.0, reduction="mean"))
    ref = _reference(pred, loss_weight=1.0, reduction="mean")
    assert jnp.allclose(out, ref, rtol=1e-5, atol=1e-6), (out, ref)

    out_s = jax.block_until_ready(weighted_tv_loss(pred, loss_weight=0.5, reduction="sum"))
    ref_s = _reference(pred, loss_weight=0.5, reduction="sum")
    assert jnp.allclose(out_s, ref_s, rtol=1e-5, atol=1e-4), (out_s, ref_s)

    # Multi-block + partial-last-block + plane-mask path (P=12, tiny block
    # budget forces TP=8 -> 2 blocks, last one partial).
    pred2 = jax.random.normal(jax.random.PRNGKey(1), (2, 6, 16, 16), dtype=jnp.float32)
    y_sum, x_sum = jax.block_until_ready(_tv_sums(pred2, target_block_bytes=4096))
    p2 = pred2.astype(jnp.float32)
    ref_y = jnp.sum(jnp.abs(p2[:, :, :-1, :] - p2[:, :, 1:, :]))
    ref_x = jnp.sum(jnp.abs(p2[:, :, :, :-1] - p2[:, :, :, 1:]))
    assert jnp.allclose(y_sum, ref_y, rtol=1e-5, atol=1e-4), (y_sum, ref_y)
    assert jnp.allclose(x_sum, ref_x, rtol=1e-5, atol=1e-4), (x_sum, ref_x)

    # Non-power-of-two W exercises the DMA'd horizontal-mask fallback path.
    pred3 = jax.random.normal(jax.random.PRNGKey(2), (1, 4, 8, 48), dtype=jnp.float32)
    out3 = jax.block_until_ready(weighted_tv_loss(pred3, loss_weight=1.0, reduction="mean"))
    ref3 = _reference(pred3, loss_weight=1.0, reduction="mean")
    assert jnp.allclose(out3, ref3, rtol=1e-5, atol=1e-6), (out3, ref3)

    print("KERNEL_OK")
</pallas_src>

<mosaic_0001>
module attributes {stable_mosaic.version = 11 : i64} {
  func.func @_tv_partial_kernel(%arg0: i32, %arg1: memref<8x256xf32, #tpu.memory_space<vmem>>, %arg2: memref<1x8x128xf32, #tpu.memory_space<vmem>>, %arg3: memref<1x8x128xf32, #tpu.memory_space<vmem>>) attributes {dimension_semantics = [#tpu.dimension_semantics<parallel>], iteration_bounds = array<i64: 1>, scalar_prefetch = 0 : i64, scratch_operands = 0 : i64, tpu.core_type = #tpu.core_type<tc>, window_params = [{transform_indices = @transform_0, window_bounds = array<i64: 8, 256>}, {transform_indices = @transform_1, window_bounds = array<i64: 1, 8, 128>}, {transform_indices = @transform_2, window_bounds = array<i64: 1, 8, 128>}]} {
    %c0 = arith.constant 0 : index
    %c0_0 = arith.constant 0 : index
    %0 = vector.load %arg1[%c0, %c0_0] : memref<8x256xf32, #tpu.memory_space<vmem>>, vector<8x256xf32>
    %1 = tpu.iota {dimensions = array<i32: 1>} : vector<1x256xi32>
    %c240_i32 = arith.constant 240 : i32
    %2 = vector.broadcast %c240_i32 : i32 to vector<1x256xi32>
    %3 = arith.cmpi slt, %1, %2 : vector<1x256xi32>
    %4 = arith.extui %3 : vector<1x256xi1> to vector<1x256xi32>
    %5 = arith.sitofp %4 : vector<1x256xi32> to vector<1x256xf32>
    %c15_i32 = arith.constant 15 : i32
    %6 = vector.broadcast %c15_i32 : i32 to vector<1x256xi32>
    %7 = arith.andi %1, %6 : vector<1x256xi32>
    %c15_i32_1 = arith.constant 15 : i32
    %8 = vector.broadcast %c15_i32_1 : i32 to vector<1x256xi32>
    %9 = arith.cmpi ne, %7, %8 : vector<1x256xi32>
    %10 = arith.extui %9 : vector<1x256xi1> to vector<1x256xi32>
    %11 = arith.sitofp %10 : vector<1x256xi32> to vector<1x256xf32>
    %c240_i32_2 = arith.constant 240 : i32
    %12 = tpu.dynamic_rotate %0 by %c240_i32_2 dim 1 : vector<8x256xf32>, i32 -> vector<8x256xf32>
    %13 = arith.subf %0, %12 : vector<8x256xf32>
    %14 = math.absf %13 : vector<8x256xf32>
    %15 = vector.broadcast %5 : vector<1x256xf32> to vector<8x256xf32>
    %16 = arith.mulf %14, %15 : vector<8x256xf32>
    %17 = vector.shape_cast %16 : vector<8x256xf32> to vector<1x8x256xf32>
    %cst = arith.constant dense<0.000000e+00> : vector<1xf32>
    %18 = vector.multi_reduction <add>, %17, %cst [1, 2] : vector<1x8x256xf32> to vector<1xf32>
    %19 = vector.shape_cast %18 : vector<1xf32> to vector<1x1x1xf32>
    %20 = vector.extract %19[0, 0, 0] : f32 from vector<1x1x1xf32>
    %c255_i32 = arith.constant 255 : i32
    %21 = tpu.dynamic_rotate %0 by %c255_i32 dim 1 : vector<8x256xf32>, i32 -> vector<8x256xf32>
    %22 = arith.subf %0, %21 : vector<8x256xf32>
    %23 = math.absf %22 : vector<8x256xf32>
    %24 = vector.broadcast %11 : vector<1x256xf32> to vector<8x256xf32>
    %25 = arith.mulf %23, %24 : vector<8x256xf32>
    %26 = vector.shape_cast %25 : vector<8x256xf32> to vector<1x8x256xf32>
    %cst_3 = arith.constant dense<0.000000e+00> : vector<1xf32>
    %27 = vector.multi_reduction <add>, %26, %cst_3 [1, 2] : vector<1x8x256xf32> to vector<1xf32>
    %28 = vector.shape_cast %27 : vector<1xf32> to vector<1x1x1xf32>
    %29 = vector.extract %28[0, 0, 0] : f32 from vector<1x1x1xf32>
    %30 = vector.broadcast %20 : f32 to vector<1x8x128xf32>
    %c0_4 = arith.constant 0 : index
    %c0_5 = arith.constant 0 : index
    %c0_6 = arith.constant 0 : index
    %31 = vector.load %arg2[%c0_4, %c0_5, %c0_6] : memref<1x8x128xf32, #tpu.memory_space<vmem>>, vector<1x8x128xf32>
    tpu.vector_store %arg2[%c0_4, %c0_5, %c0_6], %30 {strides = array<i32>} : memref<1x8x128xf32, #tpu.memory_space<vmem>>, vector<1x8x128xf32>,
    %32 = vector.broadcast %29 : f32 to vector<1x8x128xf32>
    %c0_7 = arith.constant 0 : index
    %c0_8 = arith.constant 0 : index
    %c0_9 = arith.constant 0 : index
    %33 = vector.load %arg3[%c0_7, %c0_8, %c0_9] : memref<1x8x128xf32, #tpu.memory_space<vmem>>, vector<1x8x128xf32>
    tpu.vector_store %arg3[%c0_7, %c0_8, %c0_9], %32 {strides = array<i32>} : memref<1x8x128xf32, #tpu.memory_space<vmem>>, vector<1x8x128xf32>,
    return
  }
  func.func @transform_0(%arg0: i32) -> (i32, i32) {
    %c0_i32 = arith.constant 0 : i32
    %c0_i32_0 = arith.constant 0 : i32
    return %arg0, %c0_i32 : i32, i32
  }
  func.func @transform_1(%arg0: i32) -> (i32, i32, i32) {
    %c0_i32 = arith.constant 0 : i32
    %c0_i32_0 = arith.constant 0 : i32
    %c0_i32_1 = arith.constant 0 : i32
    return %arg0, %c0_i32, %c0_i32_0 : i32, i32, i32
  }
  func.func @transform_2(%arg0: i32) -> (i32, i32, i32) {
    %c0_i32 = arith.constant 0 : i32
    %c0_i32_0 = arith.constant 0 : i32
    %c0_i32_1 = arith.constant 0 : i32
    return %arg0, %c0_i32, %c0_i32_0 : i32, i32, i32
  }
}

</mosaic_0001>

<bundles_post_ra>
// kernel: tpu_custom_call.1
= control target key start
LH: loop header
LB: loop body
LE: loop exit
PB: predicated region body
PF: predicated region fallthrough
CT: control target
= control target key end

     0   :  { %8 = vsyncpa [#allocation3], 0  ;;  %s231_s0 = inlined_call_operand.hbm [shape: f32[8,256], index: 0, kind: input, shape index: {}]   ;;  %s232_s1 = inlined_call_operand.hbm [shape: f32[1,8,128], index: 1, kind: output, shape index: {0}]   ;;  %s233_s2 = inlined_call_operand.hbm [shape: f32[1,8,128], index: 2, kind: output, shape index: {1}]  }
   0x1   :  { %9 = vsyncpa [#allocation4], 0 }
   0x2   :  { %10 = vsyncpa [#allocation7], 0  ;;  %s201_s9 = smov [#allocation2]  }
   0x3   :  { %s17_s10 = sshll.u32 %s201_s9, 4  ;;  %s18_s10 = int_to_ptr.vmem [resolvable:$true] %s17_s10 }
   0x4   :  { %s143_s11 = scalar_lea.vmem %s18_s10, 256  ;;  %p148_p1 = scmp.lt.s32.totalorder %s18_s10, %s18_s10 }
   0x5   :  { %p144_p0 = scmp.ne.s32.totalorder %s18_s10, %s143_s11  ;;  %p149_p2 = scmp.lt.s32.totalorder %s143_s11, %s143_s11 }
   0x7   :  { %p150_p3 = por %p149_p2, %p148_p1 }
   0x9   :  { %p151_p4 = pnand %p150_p3, %p144_p0 }
   0xb   :  { %154 = shalt.err (!%p151_p4)
}
   0xc   :  { %20 = dma.hbm_to_vmem [thread:$0]  %s231_s0, 256, %s18_s10, [#allocation3]  }
   0xd   :  { %195 = dma.done.wait [#allocation3], 256  }
   0xe   :  { %196 = vsyncadd [#allocation3], 4294967040  ;;  %v24_v0 = vld [vmem:[#allocation2] sm:$0xff]  ;;  %s202_s14 = smov 127   ;;  %s203_s15 = smov 112   ;;  %v25_v1 = vld [vmem:[#allocation2 + $0x8] sm:$0xff]  ;;  %v26_v2 = vlaneseq }
   0xf   :  { %66 = vrot.lane.b32.xlu1 %v24_v0, %s202_s14  ;;  %43 = vrot.lane.b32.xlu0 %v24_v0, %s203_s15  ;;  %v204_v19 = vmov 0.0   ;;  %s205_s0 = smov [#allocation5]   ;;  %s206_s17 = smov [#allocation6]  }
  0x10   :  { %v27_v3 = vand.u32 127, %v26_v2  ;;  %s99_s16 = sshll.u32 %s205_s0, 4  ;;  %s109_s18 = sshll.u32 %s206_s17, 4  ;;  %s100_s16 = int_to_ptr.vmem [resolvable:$true] %s99_s16  ;;  %s110_s18 = int_to_ptr.vmem [resolvable:$true] %s109_s18 }
  0x11   :  { %s155_s21 = scalar_lea.vmem %s100_s16, 128  ;;  %p160_p6 = scmp.lt.s32.totalorder %s100_s16, %s100_s16 }
  0x12   :  { %v28_v4 = vadd.s32 128, %v27_v3  ;;  %v35_v7 = vand.u32 15, %v27_v3  ;;  %vm70_vm0 = vcmp.lt.s32.totalorder %v27_v3, 127  ;;  %vm47_vm1 = vcmp.lt.s32.totalorder %v27_v3, 112  ;;  %p156_p5 = scmp.ne.s32.totalorder %s100_s16, %s155_s21  ;;  %p161_p7 = scmp.lt.s32.totalorder %s155_s21, %s155_s21 }
  0x13   :  { %68 = vrot.lane.b32.xlu1 %v25_v1, %s202_s14  ;;  %45 = vrot.lane.b32.xlu0 %v25_v1, %s203_s15 }
  0x14   :  { %v36_v8 = vand.u32 15, %v28_v4  ;;  %vm37_vm2 = vcmp.ne.s32.totalorder %v35_v7, 15  ;;  %vm30_vm4 = vcmp.lt.s32.totalorder %v28_v4, 240  ;;  %p162_p8 = por %p161_p7, %p160_p6 }
  0x15   :  { %v123_v20 = vsel %vm37_vm2, 1.0, %v204_v19  ;;  %v122_v24 = vsel %vm30_vm4, 1.0, %v204_v19 }
  0x16   :  { %vm38_vm3 = vcmp.ne.s32.totalorder %v36_v8, 15  ;;  %p163_p9 = pnand %p162_p8, %p156_p5 }
  0x17   :  { %v124_v21 = vsel %vm38_vm3, 1.0, %v204_v19 }
  0x81   :  { %v67_v5 = vpop.permute.xlu1 %66  ;;  %v44_v6 = vpop.permute.xlu0 %43 }
  0x85   :  { %v69_v9 = vpop.permute.xlu1 %68  ;;  %v46_v10 = vpop.permute.xlu0 %45 }
  0x86   :  { %v71_v11 = vsel %vm70_vm0, %v67_v5, %v69_v9  ;;  %v72_v12 = vsel %vm70_vm0, %v69_v9, %v67_v5  ;;  %v48_v13 = vsel %vm47_vm1, %v44_v6, %v46_v10  ;;  %v49_v14 = vsel %vm47_vm1, %v46_v10, %v44_v6 }
  0x87   :  { %v73_v15 = vsub.f32 %v24_v0, %v71_v11  ;;  %v74_v16 = vsub.f32 %v25_v1, %v72_v12  ;;  %v51_v17 = vsub.f32 %v25_v1, %v49_v14  ;;  %v50_v18 = vsub.f32 %v24_v0, %v48_v13 }
  0x89   :  { %v75_v22 = vand.u32 2147483647, %v73_v15  ;;  %v76_v23 = vand.u32 2147483647, %v74_v16  ;;  %v53_v25 = vand.u32 2147483647, %v51_v17 }
  0x8a   :  { %v52_v28 = vand.u32 2147483647, %v50_v18 }
  0x8b   :  { %v77_v26 = vmul.f32 %v123_v20, %v75_v22  ;;  %v78_v27 = vmul.f32 %v124_v21, %v76_v23  ;;  %v55_v29 = vmul.f32 %v122_v24, %v53_v25 }
  0x8d   :  { %v79_v30 = vadd.f32 %v78_v27, %v77_v26  ;;  %v56_v31 = vadd.f32 %v55_v29, %v52_v28 }
  0x8f   :  { %80 = vadd.xlane.f32.xlu1 %v79_v30  ;;  %57 = vadd.xlane.f32.xlu0 %v56_v31 }
 0x118   :  { %v81_v32 = vpop.xlane.xlu1 %80  ;;  %v58_v34 = vpop.xlane.xlu0 %57 }
 0x119   :  { %v82_v33 = vrot.slane %v81_v32, 4  ;;  %v59_v35 = vrot.slane %v58_v34, 4 }
 0x11b   :  { %v83_v36 = vadd.f32 %v82_v33, %v81_v32  ;;  %v60_v37 = vadd.f32 %v59_v35, %v58_v34 }
 0x11d   :  { %v84_v38 = vrot.slane %v83_v36, 2  ;;  %v61_v39 = vrot.slane %v60_v37, 2 }
 0x11f   :  { %v85_v40 = vadd.f32 %v84_v38, %v83_v36  ;;  %v62_v41 = vadd.f32 %v61_v39, %v60_v37 }
 0x121   :  { %v86_v42 = vrot.slane %v85_v40, 1  ;;  %v63_v43 = vrot.slane %v62_v41, 1 }
 0x123   :  { %v87_v44 = vadd.f32 %v86_v42, %v85_v40  ;;  %v64_v45 = vadd.f32 %v63_v43, %v62_v41 }
 0x125   :  { %125 = vpush %v64_v45 }
 0x126   :  { %127 = vpush %v87_v44 }
 0x156   :  { %s126_s19 = spop %125 }
 0x157   :  { %v89_v46 = vstv %s126_s19  ;;  %s128_s20 = spop %127 }
 0x158   :  { %90 = vst [vmem:[#allocation5] sm:$0xff] %v89_v46  ;;  %v91_v47 = vstv %s128_s20 }
 0x159   :  { %92 = vst [vmem:[#allocation6] sm:$0xff] %v91_v47 }
 0x15a   :  { %166 = shalt.err (!%p163_p9)
}
 0x15b   :  { %102 = dma.vmem_to_hbm [thread:$0]  %s100_s16, 128, %s232_s1, [#allocation4]  }
 0x15c   :  { %s175_s24 = scalar_lea.vmem %s110_s18, 128  ;;  %p180_p11 = scmp.lt.s32.totalorder %s110_s18, %s110_s18 }
 0x15d   :  { %p176_p10 = scmp.ne.s32.totalorder %s110_s18, %s175_s24  ;;  %p181_p12 = scmp.lt.s32.totalorder %s175_s24, %s175_s24 }
 0x15f   :  { %p182_p13 = por %p181_p12, %p180_p11 }
 0x161   :  { %p183_p0 = pnand %p182_p13, %p176_p10 }
 0x163   :  { %186 = shalt.err (!%p183_p0)
}
 0x164   :  { %112 = dma.vmem_to_hbm [thread:$0]  %s110_s18, 128, %s233_s2, [#allocation7]  }
 0x165   :  { %197 = dma.done.wait [#allocation4], 128  }
 0x166   :  { %198 = vsyncadd [#allocation4], 4294967168 }
 0x167   :  { %199 = dma.done.wait [#allocation7], 128  }
 0x168   :  { %200 = vsyncadd [#allocation7], 4294967168 }
 0x169   :  { %119 = vsyncpa [#allocation3], 1 }
 0x16a   :  { %120 = vsyncpa [#allocation4], 1 }
 0x16b   :  { %121 = vsyncpa [#allocation7], 1 }

</bundles_post_ra>
